<compile_context>
chip_gen: v7x
topology: tpu7x:2x2x1
jax: 0.10.0
libtpu: 0.0.40
codegen_flags: <defaults>
</compile_context>

<pallas_src>
import functools

import jax
import jax.numpy as jnp
from jax.experimental import pallas as pl
from jax.experimental.pallas import tpu as pltpu


def _round_up(n, m):
    return ((n + m - 1) // m) * m


def _fused_mlp_kernel(x_ref, w_ref, b_ref, o_ref, act_ref):
    # x_ref:   (B_pad, D_pad)  padded input (only used at layer 0)
    # w_ref:   (D_pad, D_pad)  this layer's weight, already (Din, Dout) layout
    # b_ref:   (1, D_pad)      this layer's bias
    # o_ref:   (B_pad, D_pad)  padded output (written at the last layer only)
    # act_ref: (B_pad, D_pad)  VMEM-resident activation carried across layers
    layer = pl.program_id(0)
    n_layers = pl.num_programs(0)

    @pl.when(layer == 0)
    def _():
        act_ref[...] = x_ref[...].astype(jnp.float32)

    y = jnp.dot(act_ref[...], w_ref[...], preferred_element_type=jnp.float32)
    y = y + b_ref[...]

    @pl.when(layer < n_layers - 1)
    def _():
        act_ref[...] = jnp.tanh(y)          # EUP; padded lanes stay exactly 0

    @pl.when(layer == n_layers - 1)
    def _():
        o_ref[...] = y.astype(o_ref.dtype)  # final layer: no activation


def init_densenet_params(key, layers):
    """Deterministic init matching nn.Linear shapes: weight (out,in), bias (out,)."""
    params = []
    for j in range(len(layers) - 1):
        key, kw, kb = jax.random.split(key, 3)
        fan_in = layers[j]
        bound = 1.0 / jnp.sqrt(jnp.asarray(fan_in, jnp.float32))
        w = jax.random.uniform(kw, (layers[j + 1], layers[j]),
                               jnp.float32, -bound, bound)
        b = jax.random.uniform(kb, (layers[j + 1],),
                               jnp.float32, -bound, bound)
        params.append((w, b))
    return params


def prepare_densenet_params(params):
    """One-time prep: transpose to (Din, Dout), zero-pad every layer to a common
    D_pad (multiple of 128), and stack into (L, D_pad, D_pad) / (L, 1, D_pad).
    Done once, outside the forward hot path (no per-call w.T transpose)."""
    dims = [params[0][0].shape[1]] + [w.shape[0] for (w, _) in params]
    d_pad = _round_up(max(dims), 128)
    n_layers = len(params)
    w_stack = jnp.zeros((n_layers, d_pad, d_pad), jnp.float32)
    b_stack = jnp.zeros((n_layers, 1, d_pad), jnp.float32)
    for j, (w, b) in enumerate(params):
        dout, din = w.shape
        w_stack = w_stack.at[j, :din, :dout].set(w.T.astype(jnp.float32))
        b_stack = b_stack.at[j, 0, :dout].set(b.astype(jnp.float32))
    return w_stack, b_stack, dims[0], dims[-1], d_pad


@functools.partial(jax.jit, static_argnames=("d_in", "d_out", "d_pad"))
def densenet_forward(x, w_stack, b_stack, *, d_in, d_out, d_pad):
    """Forward pass matching DenseNet(layers, 'tanh', out_nonlinearity=None,
    normalize=False): Linear -> tanh for all but the last layer."""
    batch = x.shape[0]
    b_pad = _round_up(max(batch, 8), 8)
    n_layers = w_stack.shape[0]

    # Pad input once (zeros propagate exactly through the padded net).
    x_p = jnp.zeros((b_pad, d_pad), jnp.float32)
    x_p = x_p.at[:batch, :d_in].set(x.astype(jnp.float32))

    out_p = pl.pallas_call(
        _fused_mlp_kernel,
        out_shape=jax.ShapeDtypeStruct((b_pad, d_pad), jnp.float32),
        grid=(n_layers,),
        in_specs=[
            # input activations: constant block -> DMA'd once, used at layer 0
            pl.BlockSpec((b_pad, d_pad), lambda l: (0, 0)),
            # per-layer weight / bias: streamed (double-buffered) over the grid
            pl.BlockSpec((None, d_pad, d_pad), lambda l: (l, 0, 0)),
            pl.BlockSpec((None, 1, d_pad), lambda l: (l, 0, 0)),
        ],
        out_specs=pl.BlockSpec((b_pad, d_pad), lambda l: (0, 0)),
        scratch_shapes=[pltpu.VMEM((b_pad, d_pad), jnp.float32)],
        compiler_params=pltpu.CompilerParams(
            # layer axis is a sequential dependency
            dimension_semantics=("arbitrary",),
        ),
    )(x_p, w_stack, b_stack)

    return out_p[:batch, :d_out]


def densenet_reference(params, x):
    n_layers = len(params)
    for j, (w, b) in enumerate(params):
        x = x @ w.T + b
        if j != n_layers - 1:
            x = jnp.tanh(x)
    return x


if __name__ == "__main__":
    # Small shapes consistent with the module: MLP layers [8, 32, 32, 16], batch 2.
    layers = [8, 32, 32, 16]
    batch = 2

    key = jax.random.PRNGKey(0)
    key, kx = jax.random.split(key)
    x = jax.random.normal(kx, (batch, layers[0]), jnp.float32)

    params = init_densenet_params(key, layers)
    w_stack, b_stack, d_in, d_out, d_pad = prepare_densenet_params(params)

    out = densenet_forward(x, w_stack, b_stack,
                           d_in=d_in, d_out=d_out, d_pad=d_pad)
    out = jax.block_until_ready(out)

    ref = densenet_reference(params, x)
    assert out.shape == (batch, layers[-1])
    assert jnp.allclose(out, ref, atol=1e-5, rtol=1e-5), "mismatch vs reference"

    print("KERNEL_OK")
</pallas_src>

<mosaic_0001>
module attributes {stable_mosaic.version = 11 : i64} {
  func.func @_fused_mlp_kernel(%arg0: i32, %arg1: memref<8x128xf32, #tpu.memory_space<vmem>>, %arg2: memref<1x128x128xf32, #tpu.memory_space<vmem>>, %arg3: memref<1x1x128xf32, #tpu.memory_space<vmem>>, %arg4: memref<8x128xf32, #tpu.memory_space<vmem>>, %arg5: memref<8x128xf32, #tpu.memory_space<vmem>>) attributes {dimension_semantics = [#tpu.dimension_semantics<arbitrary>], iteration_bounds = array<i64: 3>, scalar_prefetch = 0 : i64, scratch_operands = 1 : i64, tpu.core_type = #tpu.core_type<tc>, window_params = [{pipeline_mode = #tpu.pipeline_mode<synchronous>, transform_indices = @transform_0, window_bounds = array<i64: 8, 128>}, {transform_indices = @transform_1, window_bounds = array<i64: 1, 128, 128>}, {transform_indices = @transform_2, window_bounds = array<i64: 1, 1, 128>}, {pipeline_mode = #tpu.pipeline_mode<synchronous>, transform_indices = @transform_3, window_bounds = array<i64: 8, 128>}]} {
    %c0_i32 = arith.constant 0 : i32
    %0 = arith.cmpi eq, %arg0, %c0_i32 : i32
    %1 = arith.extui %0 : i1 to i32
    %c0_i32_0 = arith.constant 0 : i32
    %2 = arith.cmpi ne, %1, %c0_i32_0 : i32
    scf.if %2 {
      %c0_11 = arith.constant 0 : index
      %c0_12 = arith.constant 0 : index
      %17 = vector.load %arg1[%c0_11, %c0_12] : memref<8x128xf32, #tpu.memory_space<vmem>>, vector<8x128xf32>
      %c0_13 = arith.constant 0 : index
      %c0_14 = arith.constant 0 : index
      %18 = vector.load %arg5[%c0_13, %c0_14] : memref<8x128xf32, #tpu.memory_space<vmem>>, vector<8x128xf32>
      tpu.vector_store %arg5[%c0_13, %c0_14], %17 {strides = array<i32>} : memref<8x128xf32, #tpu.memory_space<vmem>>, vector<8x128xf32>,
    } else {
    }
    %c0 = arith.constant 0 : index
    %c0_1 = arith.constant 0 : index
    %3 = vector.load %arg5[%c0, %c0_1] : memref<8x128xf32, #tpu.memory_space<vmem>>, vector<8x128xf32>
    %c0_2 = arith.constant 0 : index
    %c0_3 = arith.constant 0 : index
    %c0_4 = arith.constant 0 : index
    %4 = vector.load %arg2[%c0_2, %c0_3, %c0_4] : memref<1x128x128xf32, #tpu.memory_space<vmem>>, vector<1x128x128xf32>
    %5 = vector.shape_cast %4 : vector<1x128x128xf32> to vector<128x128xf32>
    %cst = arith.constant dense<0.000000e+00> : vector<8x128xf32>
    %6 = tpu.matmul %3, %5, %cst {dimension_numbers = #tpu.dot_dimension_numbers<[1], [0], [0], [1], [0, 0, 1, 1], [], []>} : vector<8x128xf32>, vector<128x128xf32>, vector<8x128xf32> -> vector<8x128xf32>
    %c0_5 = arith.constant 0 : index
    %c0_6 = arith.constant 0 : index
    %c0_7 = arith.constant 0 : index
    %7 = vector.load %arg3[%c0_5, %c0_6, %c0_7] : memref<1x1x128xf32, #tpu.memory_space<vmem>>, vector<1x1x128xf32>
    %8 = vector.shape_cast %7 : vector<1x1x128xf32> to vector<1x128xf32>
    %9 = vector.broadcast %8 : vector<1x128xf32> to vector<8x128xf32>
    %10 = arith.addf %6, %9 : vector<8x128xf32>
    %c2_i32 = arith.constant 2 : i32
    %11 = arith.cmpi slt, %arg0, %c2_i32 : i32
    %12 = arith.extui %11 : i1 to i32
    %c0_i32_8 = arith.constant 0 : i32
    %13 = arith.cmpi ne, %12, %c0_i32_8 : i32
    scf.if %13 {
      %17 = math.tanh %10 : vector<8x128xf32>
      %c0_11 = arith.constant 0 : index
      %c0_12 = arith.constant 0 : index
      %18 = vector.load %arg5[%c0_11, %c0_12] : memref<8x128xf32, #tpu.memory_space<vmem>>, vector<8x128xf32>
      tpu.vector_store %arg5[%c0_11, %c0_12], %17 {strides = array<i32>} : memref<8x128xf32, #tpu.memory_space<vmem>>, vector<8x128xf32>,
    } else {
    }
    %c2_i32_9 = arith.constant 2 : i32
    %14 = arith.cmpi eq, %arg0, %c2_i32_9 : i32
    %15 = arith.extui %14 : i1 to i32
    %c0_i32_10 = arith.constant 0 : i32
    %16 = arith.cmpi ne, %15, %c0_i32_10 : i32
    scf.if %16 {
      %c0_11 = arith.constant 0 : index
      %c0_12 = arith.constant 0 : index
      %17 = vector.load %arg4[%c0_11, %c0_12] : memref<8x128xf32, #tpu.memory_space<vmem>>, vector<8x128xf32>
      tpu.vector_store %arg4[%c0_11, %c0_12], %10 {strides = array<i32>} : memref<8x128xf32, #tpu.memory_space<vmem>>, vector<8x128xf32>,
    } else {
    }
    return
  }
  func.func @transform_0(%arg0: i32) -> (i32, i32) {
    %c0_i32 = arith.constant 0 : i32
    %c0_i32_0 = arith.constant 0 : i32
    %c0_i32_1 = arith.constant 0 : i32
    return %c0_i32, %c0_i32_0 : i32, i32
  }
  func.func @transform_1(%arg0: i32) -> (i32, i32, i32) {
    %c0_i32 = arith.constant 0 : i32
    %c0_i32_0 = arith.constant 0 : i32
    %c0_i32_1 = arith.constant 0 : i32
    return %arg0, %c0_i32, %c0_i32_0 : i32, i32, i32
  }
  func.func @transform_2(%arg0: i32) -> (i32, i32, i32) {
    %c0_i32 = arith.constant 0 : i32
    %c0_i32_0 = arith.constant 0 : i32
    %c0_i32_1 = arith.constant 0 : i32
    return %arg0, %c0_i32, %c0_i32_0 : i32, i32, i32
  }
  func.func @transform_3(%arg0: i32) -> (i32, i32) {
    %c0_i32 = arith.constant 0 : i32
    %c0_i32_0 = arith.constant 0 : i32
    %c0_i32_1 = arith.constant 0 : i32
    return %c0_i32, %c0_i32_0 : i32, i32
  }
}

</mosaic_0001>

<bundles_post_ra>
// kernel: densenet_forward.1
= control target key start
LH: loop header
LB: loop body
LE: loop exit
PB: predicated region body
PF: predicated region fallthrough
CT: control target
= control target key end

     0   :  { %8 = vsyncpa [#allocation4], 0  ;;  %s721_s0 = inlined_call_operand.vmem [shape: f32[8,128], index: 0, kind: input, shape index: {}]   ;;  %s722_s1 = inlined_call_operand.hbm [shape: f32[3,128,128], index: 1, kind: input, shape index: {}]   ;;  %s723_s2 = inlined_call_operand.vmem [shape: f32[3,1,128], index: 2, kind: input, shape index: {}]   ;;  %s724_s3 = inlined_call_operand.vmem [shape: f32[8,128], index: 3, kind: output, shape index: {}]  }
   0x1   :  { %10 = vsyncpa [#allocation4 + $0x1], 0  ;;  %s578_s12 = smov 0   ;;  %s580_s13 = smov 0  }
   0x2   :  { %s582_s14 = smov 0   ;;  %s584_s15 = smov 0  }
   0x3 LB: > { %s597_s16 = sadd.s32 4294967295, %s550_s15   ;;  %s600_s17 = sadd.s32 1, %s550_s15   ;;  %s550_s15 = sphi %s584_s15, %s731_s15   ;;  %s546_s14 = sphi %s582_s14, %s730_s14   ;;  %s542_s13 = sphi %s580_s13, %s729_s13   ;;  %s538_s12 = sphi %s578_s12, %s728_s12  }
   0x4   : > { %s41_s18 = ssub.s32 %s550_s15, %s600_s17  ;;  %s44_s19 = sadd.s32 1, %s546_s14 }
   0x5   : > { %p42_p0 = scmp.eq.s32.totalorder %s41_s18, 0  ;;  %p51_p1 = scmp.ne.s32.totalorder %s546_s14, %s542_s13 }
   0x6   : > { %p52_p2 = scmp.eq.s32.totalorder %s550_s15, 0  ;;  %p57_p3 = scmp.ne.s32.totalorder %s542_s13, %s538_s12 }
   0x7   : > { %s610_s20 = scalar_select %p42_p0, %s546_s14, %s44_s19  }
   0x8   : > { %p53_p4 = por %p52_p2, %p51_p1  ;;  %p58_p5 = scmp.eq.s32.totalorder %s597_s16, 0 }
   0x9   : > { %p446_p6 = scmp.lt.s32.totalorder %s550_s15, 3  ;;  %s131_s22 = sand.u32 1, %s546_s14  }
   0xa   : > { %p614_p7 = por %p58_p5, %p57_p3  ;;  %s352_s23 = sshll.u32 %s131_s22, 7 }
   0xb   : > { %s363_s24 = sshll.u32 %s550_s15, 11  ;;  %s135_s28 = scalar_lea.vmem [#allocation3], %s352_s23 }
   0xc   : > { %s623_s27 = scalar_lea.hbm %s722_s1, %s363_s24  ;;  %s142_s29 = sshll.u32 %s135_s28, 4  ;;  %s625_s29 = int_to_ptr.vmem [resolvable:$true] %s142_s29 }
   0xd   : > { %p627_p8 = pnand %p446_p6, %p53_p4  ;;  %s632_s4 = scalar_lea.sflag [#allocation4], %s131_s22 }
   0xe   : > { %s486_s5 = scalar_lea.hbm %s623_s27, 2048  ;;  %s491_s8 = scalar_lea.hbm %s722_s1, 6144 }
   0xf   : > { %p487_p10 = scmp.ne.s32.totalorder %s623_s27, %s486_s5  ;;  %p488_p11 = pneg %p627_p8 }
  0x10   : > { %p492_p0 = scmp.lt.u32.totalorder %s623_s27, %s722_s1  ;;  %p493_p1 = scmp.lt.u32.totalorder %s491_s8, %s486_s5 }
  0x11   : > { %p489_p12 = pnand %p488_p11, %p487_p10  ;;  %p495_p3 = scmp.lt.u32.totalorder %s486_s5, %s623_s27 }
  0x12   : > { %p494_p2 = por %p493_p1, %p492_p0 }
  0x13   : > { %p490_p13 = pneg %p489_p12 }
  0x14   : > { %p496_p4 = por %p495_p3, %p494_p2 }
  0x16   : > { %p497_p5 = pnand %p496_p4, %p490_p13 }
  0x18   : > { %500 = shalt.err (!%p497_p5)
}
  0x19   : > { %s501_s11 = scalar_lea.vmem %s625_s29, 2048  ;;  %s552_s12 = smov [#allocation3]  }
  0x1a   : > { %p502_p6 = scmp.ne.s32.totalorder %s625_s29, %s501_s11  ;;  %s506_s18 = sshll.u32 %s552_s12, 4  ;;  %s507_s18 = int_to_ptr.vmem [resolvable:$false] %s506_s18 }
  0x1b   : > { %s508_s19 = scalar_lea.vmem %s507_s18, 4096  ;;  %p509_p9 = scmp.lt.s32.totalorder %s625_s29, %s507_s18 }
  0x1c   : > { %p504_p10 = pnand %p502_p6, %p488_p11  ;;  %p510_p0 = scmp.lt.s32.totalorder %s508_s19, %s501_s11 }
  0x1e   : > { %p505_p12 = pneg %p504_p10  ;;  %p511_p1 = por %p510_p0, %p509_p9 }
  0x20   : > { %p512_p2 = pnand %p511_p1, %p505_p12 }
  0x22   : > { %515 = shalt.err (!%p512_p2)
}
  0x23   : > { %s553_s22 = smov 128   ;;  %s554_s23 = smov 8  }
  0x24   : > { %445 = dma.hbm_to_vmem [thread:$0]  (!%p627_p8), %s623_s27, 2048, %s625_s29, %s632_s4, %s553_s22, %s553_s22, %s554_s23  }
  0x25   : > { %p156_p11 = scmp.lt.s32.totalorder %s550_s15, 4  ;;  %p727_p13 = scmp.ge.s32.totalorder %s550_s15, 1 }
  0x27   : > { %p157_p3 = pnand %p727_p13, %p156_p11 }
  0x28   : > { %s162_s24 = sand.u32 (!%p157_p3), 1, %s542_s13  }
  0x29   : > { %160 = sbr.rel (%p157_p3) target bundleno = 328 (0x148), region = 32  ;;  %s356_s25 = sshll.u32 (!%p157_p3), %s162_s24, 7 }
  0x2a   : > { %s163_s26 = scalar_lea.sflag (!%p157_p3), [#allocation4], %s162_s24  ;;  %s664_s28 = scalar_lea.vmem (!%p157_p3), [#allocation3], %s356_s25 }
  0x30   : > { %533 = dma.done.wait (%p614_p7), %s163_s26, 2048  }
  0x31   : > { %535 = vsyncadd (%p614_p7), %s163_s26, 4294965248  ;;  %p187_p9 = scmp.lt.s32.totalorder %s597_s16, 2  ;;  %p357_p8 = scmp.ne.s32.totalorder %s597_s16, 0 }
  0x32   : > { %v194_v0 = vld [vmem:[%s721_s0] sm:$0xff] (!%p357_p8) }
  0x33   : > { %s672_s27 = scalar_select %p187_p9, %s597_s16, 2 }
  0x34   : > { %193 = sbr.rel (%p357_p8) target bundleno = 59 (0x3b), region = 40  ;;  %195 = vst [vmem:[#allocation2] sm:$0xff] (!%p357_p8), %v194_v0 }
  0x35   : > { %s189_s30 = scalar_lea.vmem %s723_s2, %s672_s27 }
  0x3b PF: > { %v197_v1 = vld [vmem:[%s664_s28] sm:$0xff]  ;;  %v198_v2 = vld [vmem:[%s664_s28 + $0x8] sm:$0xff]  ;;  %v199_v3 = vld [vmem:[%s664_s28 + $0x10] sm:$0xff]  ;;  %v555_v4 = vmov 0.0|0.0   ;;  %vm556_vm0 = vmmov 0   ;;  %v557_v7 = vmov 0.0  }
  0x3c   : > { %416 = vmatprep.subr.bf16.mxu0 %v555_v4  ;;  %v417_v5 = vpack.c.bf16 %v198_v2, %v197_v1  ;;  %v200_v6 = vld [vmem:[%s664_s28 + $0x18] sm:$0xff]  ;;  %413 = vmatprep.mubr.msk.f32.mxu0 %vm556_vm0, %v557_v7  ;;  %v201_v9 = vld [vmem:[%s664_s28 + $0x20] sm:$0xff]  ;;  %v202_v10 = vld [vmem:[%s664_s28 + $0x28] sm:$0xff]  ;;  %p359_p7 = scmp.ge.s32.totalorder %s597_s16, 2 }
  0x3d   : > { %v420_v8 = vpack.c.bf16 %v200_v6, %v199_v3  ;;  %v423_v11 = vpack.c.bf16 %v202_v10, %v201_v9  ;;  %v203_v12 = vld [vmem:[%s664_s28 + $0x30] sm:$0xff]  ;;  %v204_v13 = vld [vmem:[%s664_s28 + $0x38] sm:$0xff]  ;;  %v205_v15 = vld [vmem:[%s664_s28 + $0x40] sm:$0xff] }
  0x3e   : > { %418 = vmatpush3.bf16.msra.mxu0 %v417_v5  ;;  %v426_v14 = vpack.c.bf16 %v204_v13, %v203_v12  ;;  %v206_v16 = vld [vmem:[%s664_s28 + $0x48] sm:$0xff]  ;;  %v207_v18 = vld [vmem:[%s664_s28 + $0x50] sm:$0xff]  ;;  %v208_v19 = vld [vmem:[%s664_s28 + $0x58] sm:$0xff] }
  0x3f   : > { %419 = vmatprep.subr.bf16.mxu0 %v555_v4  ;;  %v429_v17 = vpack.c.bf16 %v206_v16, %v205_v15  ;;  %v432_v20 = vpack.c.bf16 %v208_v19, %v207_v18  ;;  %v209_v21 = vld [vmem:[%s664_s28 + $0x60] sm:$0xff]  ;;  %v210_v22 = vld [vmem:[%s664_s28 + $0x68] sm:$0xff]  ;;  %v211_v24 = vld [vmem:[%s664_s28 + $0x70] sm:$0xff] }
  0x40   : > { %v435_v23 = vpack.c.bf16 %v210_v22, %v209_v21  ;;  %v212_v25 = vld [vmem:[%s664_s28 + $0x78] sm:$0xff] }
  0x41   : > { %v438_v26 = vpack.c.bf16 %v212_v25, %v211_v24  ;;  %v196_v27 = vld [vmem:[#allocation2] sm:$0xff] }
  0x42   : > { %421 = vmatpush3.bf16.msra.mxu0 %v420_v8  ;;  %v358_v28 = vld [vmem:[%s189_s30] ss:$0 sm:$0xff] }
  0x43   : > { %422 = vmatprep.subr.bf16.mxu0 %v555_v4 }
  0x46   : > { %424 = vmatpush3.bf16.msra.mxu0 %v423_v11 }
  0x47   : > { %425 = vmatprep.subr.bf16.mxu0 %v555_v4 }
  0x4a   : > { %427 = vmatpush3.bf16.msra.mxu0 %v426_v14 }
  0x4b   : > { %428 = vmatprep.subr.bf16.mxu0 %v555_v4 }
  0x4e   : > { %430 = vmatpush3.bf16.msra.mxu0 %v429_v17 }
  0x4f   : > { %431 = vmatprep.subr.bf16.mxu0 %v555_v4 }
  0x52   : > { %433 = vmatpush3.bf16.msra.mxu0 %v432_v20 }
  0x53   : > { %434 = vmatprep.subr.bf16.mxu0 %v555_v4 }
  0x56   : > { %436 = vmatpush3.bf16.msra.mxu0 %v435_v23 }
  0x57   : > { %437 = vmatprep.subr.bf16.mxu0 %v555_v4 }
  0x5a   : > { %439 = vmatpush3.bf16.msra.mxu0 %v438_v26 }
  0x5d   : > { %414 = vmatmul.mubr.f32.vlgmr.msra.gmra.mrb[0].mxu0 %v196_v27 }
 0x12b   : > { %293 = sbr.rel (%p359_p7) target bundleno = 319 (0x13f), region = 44 }
 0x130   : > { %v286_v29 = vpop.f32.mrb[0].mxu0 }
 0x131   : > { %v287_v30 = vadd.f32 %v358_v28, %v286_v29  ;;  %v415_v31 = vpop.f32.mrb[1].mxu0 }
 0x133   : > { %484 = vtanh.f32 %v287_v30 }
 0x13d   : > { %v485_v32 = vpop.eup %484 }
 0x13e   : > { %295 = vst [vmem:[#allocation2] sm:$0xff] %v485_v32 }
 0x13f PF: > { %p360_p4 = scmp.ne.s32.totalorder %s597_s16, 2 }
 0x140   : > { %300 = vst [vmem:[%s724_s3] sm:$0xff] (!%p360_p4), %v287_v30 }
 0x141   : > { %299 = sbr.rel (%p360_p4) target bundleno = 328 (0x148), region = 48 }
 0x148 PF: > { %p13_p5 = scmp.ge.s32.totalorder %s600_s17, 5   ;;  %s728_s12 = smov %s542_s13 }
 0x149   : > { %s729_s13 = smov %s546_s14  ;;  %s730_s14 = smov %s610_s20 }
 0x14a   : > { %s731_s15 = smov %s600_s17  ;;  %15 = sbr.rel (!%p13_p5) target bundleno = 3 (0x3), region = 83 }
 0x151   :  { %312 = vsyncpa [#allocation4], 1 }
 0x152   :  { %314 = vsyncpa [#allocation4 + $0x1], 1 }

</bundles_post_ra>
